<compile_context>
chip_gen: v7x
topology: tpu7x:2x2x1
jax: 0.10.0
libtpu: 0.0.40
codegen_flags: <defaults>
</compile_context>

<pallas_src>
import jax
import jax.numpy as jnp
from jax import lax
from jax.experimental import pallas as pl
from jax.experimental.pallas import tpu as pltpu


def lstm_kernel(x_ref, wih_ref, whh_ref, b_ref, wlin_ref, blin_ref,
                out_ref, hs_sc):
    S, B, I = x_ref.shape
    H = whh_ref.shape[0]

    # ---- Hoist all weight loads / broadcasts out of the serial recurrence. --
    w_ih = wih_ref[...]                                   # (I, 4H)  f32
    w_hh = whh_ref[...]                                   # (H, 4H)  bf16 (MXU operand)
    bias = jnp.broadcast_to(b_ref[...], (B, 4 * H))       # (B, 4H)  f32

    # ---- Time recurrence: only the (B,H)@(H,4H) matmul is on the MXU path. --
    def step(t, carry):
        h, c = carry
        x_t = x_ref[t]                                    # (B, I)
        if I == 1:
            # input_size == 1: VPU broadcast-multiply, no degenerate K=1 matmul.
            gates_x = x_t * w_ih + bias                   # (B, 4H) f32
        else:
            # Generic fallback (not hit for this module, which has I == 1).
            gates_x = jnp.dot(x_t, w_ih,
                              preferred_element_type=jnp.float32) + bias

        # Recurrent matmul: bf16 operands, f32 accumulate.
        gates = gates_x + jnp.dot(h.astype(jnp.bfloat16), w_hh,
                                  preferred_element_type=jnp.float32)

        # Fused nonlinearities: one sigmoid + one tanh over the whole (B, 4H)
        # vreg, then static quarter slices.
        sig = jax.nn.sigmoid(gates)
        th = jnp.tanh(gates)
        i_g = sig[:, 0 * H:1 * H]
        f_g = sig[:, 1 * H:2 * H]
        g_g = th[:, 2 * H:3 * H]
        o_g = sig[:, 3 * H:4 * H]

        c = f_g * c + i_g * g_g
        h = o_g * jnp.tanh(c)
        hs_sc[t] = h                                      # stash for the head
        return (h, c)

    h0 = jnp.zeros((B, H), jnp.float32)
    c0 = jnp.zeros((B, H), jnp.float32)
    # Serial chain: full unroll for short sequences, partial unroll (bounded
    # code size, keeps LLO visibility) for long ones.
    lax.fori_loop(0, S, step, (h0, c0), unroll=(True if S <= 32 else 8))

    # ---- Linear head (output_size == 1): VPU mul + XLU lane-reduce. ---------
    # hs_sc is used directly as (S, B, H) -> no in-kernel reshape/relayout.
    y = jnp.sum(hs_sc[...] * wlin_ref[...], axis=-1) + blin_ref[0]   # (S, B)
    out_ref[...] = y.astype(out_ref.dtype)                # lane-dense store


def my_lstm_forward(x, w_ih, w_hh, b_ih, b_hh, w_lin, b_lin):
    """x: (S, B, I) float32 (seq-major, torch nn.LSTM default batch_first=False).
    Returns (S, B, output_size) float32."""
    S, B, I = x.shape
    H4 = w_ih.shape[0]
    H = H4 // 4
    O = w_lin.shape[0]
    assert O == 1, "kernel reads b_lin as a single SMEM scalar (output_size=1)"

    # Pre-transpose so every in-kernel contraction is row-major (x @ W); fold
    # the two LSTM biases (always summed); pre-cast W_hh to bf16 (MXU operand).
    w_ih_t = jnp.asarray(w_ih.T, jnp.float32)                 # (I, 4H)
    w_hh_bf = jnp.asarray(w_hh.T).astype(jnp.bfloat16)        # (H, 4H) bf16
    b = (b_ih + b_hh).reshape(1, 4 * H).astype(jnp.float32)   # (1, 4H)
    w_lin2 = jnp.asarray(w_lin, jnp.float32)                  # (1, H)
    b_lin1 = jnp.asarray(b_lin, jnp.float32).reshape(O)       # (1,) SMEM scalar

    vmem = pltpu.MemorySpace.VMEM
    smem = pltpu.MemorySpace.SMEM

    y2d = pl.pallas_call(
        lstm_kernel,
        out_shape=jax.ShapeDtypeStruct((S, B), jnp.float32),  # lane-dense out
        in_specs=[
            pl.BlockSpec(memory_space=vmem),   # x        (S, B, I)
            pl.BlockSpec(memory_space=vmem),   # W_ih^T   (I, 4H)  f32
            pl.BlockSpec(memory_space=vmem),   # W_hh^T   (H, 4H)  bf16
            pl.BlockSpec(memory_space=vmem),   # bias     (1, 4H)  f32
            pl.BlockSpec(memory_space=vmem),   # W_lin    (1, H)   f32
            pl.BlockSpec(memory_space=smem),   # b_lin    (1,)     scalar
        ],
        out_specs=pl.BlockSpec(memory_space=vmem),
        scratch_shapes=[
            pltpu.VMEM((S, B, H), jnp.float32),    # all hidden states
        ],
    )(x, w_ih_t, w_hh_bf, b, w_lin2, b_lin1)

    return y2d.reshape(S, B, O)


def lstm_reference(x, w_ih, w_hh, b_ih, b_hh, w_lin, b_lin):
    """Pure-JAX f32 reference matching torch.nn.LSTM + nn.Linear semantics."""
    S, B, I = x.shape
    H = w_hh.shape[1]

    def step(carry, x_t):
        h, c = carry
        gates = x_t @ w_ih.T + b_ih + h @ w_hh.T + b_hh
        i = jax.nn.sigmoid(gates[:, 0 * H:1 * H])
        f = jax.nn.sigmoid(gates[:, 1 * H:2 * H])
        g = jnp.tanh(gates[:, 2 * H:3 * H])
        o = jax.nn.sigmoid(gates[:, 3 * H:4 * H])
        c = f * c + i * g
        h = o * jnp.tanh(c)
        return (h, c), h

    h0 = jnp.zeros((B, H), jnp.float32)
    c0 = jnp.zeros((B, H), jnp.float32)
    _, hs = lax.scan(step, (h0, c0), x)
    return hs @ w_lin.T + b_lin


if __name__ == "__main__":
    # Small, deterministic shapes consistent with the module
    # (input_size=1, output_size=1, num_layers=1).
    SEQ, BATCH, INPUT, HIDDEN, OUTPUT = 8, 8, 1, 32, 1

    key = jax.random.PRNGKey(0)
    ks = jax.random.split(key, 7)
    scale = 1.0 / jnp.sqrt(HIDDEN)
    w_ih = jax.random.uniform(ks[0], (4 * HIDDEN, INPUT), jnp.float32,
                              -scale, scale)
    w_hh = jax.random.uniform(ks[1], (4 * HIDDEN, HIDDEN), jnp.float32,
                              -scale, scale)
    b_ih = jax.random.uniform(ks[2], (4 * HIDDEN,), jnp.float32, -scale, scale)
    b_hh = jax.random.uniform(ks[3], (4 * HIDDEN,), jnp.float32, -scale, scale)
    w_lin = jax.random.uniform(ks[4], (OUTPUT, HIDDEN), jnp.float32,
                               -scale, scale)
    b_lin = jax.random.uniform(ks[5], (OUTPUT,), jnp.float32, -scale, scale)
    x = jax.random.normal(ks[6], (SEQ, BATCH, INPUT), jnp.float32)

    out = my_lstm_forward(x, w_ih, w_hh, b_ih, b_hh, w_lin, b_lin)
    out = jax.block_until_ready(out)

    ref = lstm_reference(x, w_ih, w_hh, b_ih, b_hh, w_lin, b_lin)
    assert out.shape == (SEQ, BATCH, OUTPUT)
    # Tolerance relaxed vs the pure-f32 version: the recurrent matmul runs with
    # bf16 MXU operands (deliberate precision/latency trade per perf review).
    assert jnp.allclose(out, ref, atol=2e-2, rtol=2e-2), (
        float(jnp.max(jnp.abs(out - ref))))

    print("KERNEL_OK")
</pallas_src>

<mosaic_0001>
module attributes {stable_mosaic.version = 11 : i64} {
  func.func @lstm_kernel(%arg0: memref<8x8x1xf32, #tpu.memory_space<vmem>>, %arg1: memref<1x128xf32, #tpu.memory_space<vmem>>, %arg2: memref<32x128xbf16, #tpu.memory_space<vmem>>, %arg3: memref<1x128xf32, #tpu.memory_space<vmem>>, %arg4: memref<1x32xf32, #tpu.memory_space<vmem>>, %arg5: memref<1xf32, #tpu.memory_space<smem>>, %arg6: memref<8x8xf32, #tpu.memory_space<vmem>>, %arg7: memref<8x8x32xf32, #tpu.memory_space<vmem>>) attributes {dimension_semantics = [], scalar_prefetch = 0 : i64, scratch_operands = 1 : i64, tpu.core_type = #tpu.core_type<tc>} {
    %c0 = arith.constant 0 : index
    %c0_0 = arith.constant 0 : index
    %0 = vector.load %arg1[%c0, %c0_0] : memref<1x128xf32, #tpu.memory_space<vmem>>, vector<1x128xf32>
    %c0_1 = arith.constant 0 : index
    %c0_2 = arith.constant 0 : index
    %1 = vector.load %arg2[%c0_1, %c0_2] : memref<32x128xbf16, #tpu.memory_space<vmem>>, vector<32x128xbf16>
    %c0_3 = arith.constant 0 : index
    %c0_4 = arith.constant 0 : index
    %2 = vector.load %arg3[%c0_3, %c0_4] : memref<1x128xf32, #tpu.memory_space<vmem>>, vector<1x128xf32>
    %3 = vector.shape_cast %2 : vector<1x128xf32> to vector<1x128xf32>
    %4 = vector.broadcast %3 : vector<1x128xf32> to vector<8x128xf32>
    %cst = arith.constant 0.000000e+00 : f32
    %5 = vector.broadcast %cst : f32 to vector<8x32xf32>
    %cst_5 = arith.constant 0.000000e+00 : f32
    %6 = vector.broadcast %cst_5 : f32 to vector<8x32xf32>
    %c0_i32 = arith.constant 0 : i32
    %7 = arith.index_cast %c0_i32 : i32 to index
    %c0_6 = arith.constant 0 : index
    %c0_7 = arith.constant 0 : index
    %8 = vector.load %arg0[%7, %c0_6, %c0_7] : memref<8x8x1xf32, #tpu.memory_space<vmem>>, vector<1x8x1xf32>
    %9 = vector.shape_cast %8 : vector<1x8x1xf32> to vector<8x1xf32>
    %10 = vector.broadcast %9 : vector<8x1xf32> to vector<8x128xf32>
    %11 = vector.broadcast %0 : vector<1x128xf32> to vector<8x128xf32>
    %12 = arith.mulf %10, %11 : vector<8x128xf32>
    %13 = arith.addf %12, %4 : vector<8x128xf32>
    %14 = arith.truncf %5 : vector<8x32xf32> to vector<8x32xbf16>
    %cst_8 = arith.constant dense<0.000000e+00> : vector<8x128xf32>
    %15 = tpu.matmul %14, %1, %cst_8 {dimension_numbers = #tpu.dot_dimension_numbers<[1], [0], [0], [1], [0, 0, 1, 1], [], []>} : vector<8x32xbf16>, vector<32x128xbf16>, vector<8x128xf32> -> vector<8x128xf32>
    %16 = arith.addf %13, %15 : vector<8x128xf32>
    %17 = arith.negf %16 : vector<8x128xf32>
    %18 = math.exp %17 : vector<8x128xf32>
    %cst_9 = arith.constant 1.000000e+00 : f32
    %19 = vector.broadcast %cst_9 : f32 to vector<8x128xf32>
    %20 = arith.addf %19, %18 : vector<8x128xf32>
    %21 = arith.divf %19, %20 : vector<8x128xf32>
    %22 = math.tanh %16 : vector<8x128xf32>
    %23 = vector.extract_strided_slice %21 {offsets = [0, 0], sizes = [8, 32], strides = [1, 1]} : vector<8x128xf32> to vector<8x32xf32>
    %24 = vector.extract_strided_slice %21 {offsets = [0, 32], sizes = [8, 32], strides = [1, 1]} : vector<8x128xf32> to vector<8x32xf32>
    %25 = vector.extract_strided_slice %22 {offsets = [0, 64], sizes = [8, 32], strides = [1, 1]} : vector<8x128xf32> to vector<8x32xf32>
    %26 = vector.extract_strided_slice %21 {offsets = [0, 96], sizes = [8, 32], strides = [1, 1]} : vector<8x128xf32> to vector<8x32xf32>
    %27 = arith.mulf %24, %6 : vector<8x32xf32>
    %28 = arith.mulf %23, %25 : vector<8x32xf32>
    %29 = arith.addf %27, %28 : vector<8x32xf32>
    %30 = math.tanh %29 : vector<8x32xf32>
    %31 = arith.mulf %26, %30 : vector<8x32xf32>
    %32 = arith.index_cast %c0_i32 : i32 to index
    %c0_10 = arith.constant 0 : index
    %c0_11 = arith.constant 0 : index
    %33 = vector.load %arg7[%32, %c0_10, %c0_11] : memref<8x8x32xf32, #tpu.memory_space<vmem>>, vector<1x8x32xf32>
    %34 = vector.shape_cast %33 : vector<1x8x32xf32> to vector<8x32xf32>
    %35 = vector.shape_cast %31 : vector<8x32xf32> to vector<1x8x32xf32>
    tpu.vector_store %arg7[%32, %c0_10, %c0_11], %35 {strides = array<i32>} : memref<8x8x32xf32, #tpu.memory_space<vmem>>, vector<1x8x32xf32>,
    %c1_i32 = arith.constant 1 : i32
    %36 = arith.index_cast %c1_i32 : i32 to index
    %c0_12 = arith.constant 0 : index
    %c0_13 = arith.constant 0 : index
    %37 = vector.load %arg0[%36, %c0_12, %c0_13] : memref<8x8x1xf32, #tpu.memory_space<vmem>>, vector<1x8x1xf32>
    %38 = vector.shape_cast %37 : vector<1x8x1xf32> to vector<8x1xf32>
    %39 = vector.broadcast %38 : vector<8x1xf32> to vector<8x128xf32>
    %40 = vector.broadcast %0 : vector<1x128xf32> to vector<8x128xf32>
    %41 = arith.mulf %39, %40 : vector<8x128xf32>
    %42 = arith.addf %41, %4 : vector<8x128xf32>
    %43 = arith.truncf %31 : vector<8x32xf32> to vector<8x32xbf16>
    %cst_14 = arith.constant dense<0.000000e+00> : vector<8x128xf32>
    %44 = tpu.matmul %43, %1, %cst_14 {dimension_numbers = #tpu.dot_dimension_numbers<[1], [0], [0], [1], [0, 0, 1, 1], [], []>} : vector<8x32xbf16>, vector<32x128xbf16>, vector<8x128xf32> -> vector<8x128xf32>
    %45 = arith.addf %42, %44 : vector<8x128xf32>
    %46 = arith.negf %45 : vector<8x128xf32>
    %47 = math.exp %46 : vector<8x128xf32>
    %cst_15 = arith.constant 1.000000e+00 : f32
    %48 = vector.broadcast %cst_15 : f32 to vector<8x128xf32>
    %49 = arith.addf %48, %47 : vector<8x128xf32>
    %50 = arith.divf %48, %49 : vector<8x128xf32>
    %51 = math.tanh %45 : vector<8x128xf32>
    %52 = vector.extract_strided_slice %50 {offsets = [0, 0], sizes = [8, 32], strides = [1, 1]} : vector<8x128xf32> to vector<8x32xf32>
    %53 = vector.extract_strided_slice %50 {offsets = [0, 32], sizes = [8, 32], strides = [1, 1]} : vector<8x128xf32> to vector<8x32xf32>
    %54 = vector.extract_strided_slice %51 {offsets = [0, 64], sizes = [8, 32], strides = [1, 1]} : vector<8x128xf32> to vector<8x32xf32>
    %55 = vector.extract_strided_slice %50 {offsets = [0, 96], sizes = [8, 32], strides = [1, 1]} : vector<8x128xf32> to vector<8x32xf32>
    %56 = arith.mulf %53, %29 : vector<8x32xf32>
    %57 = arith.mulf %52, %54 : vector<8x32xf32>
    %58 = arith.addf %56, %57 : vector<8x32xf32>
    %59 = math.tanh %58 : vector<8x32xf32>
    %60 = arith.mulf %55, %59 : vector<8x32xf32>
    %61 = arith.index_cast %c1_i32 : i32 to index
    %c0_16 = arith.constant 0 : index
    %c0_17 = arith.constant 0 : index
    %62 = vector.load %arg7[%61, %c0_16, %c0_17] : memref<8x8x32xf32, #tpu.memory_space<vmem>>, vector<1x8x32xf32>
    %63 = vector.shape_cast %62 : vector<1x8x32xf32> to vector<8x32xf32>
    %64 = vector.shape_cast %60 : vector<8x32xf32> to vector<1x8x32xf32>
    tpu.vector_store %arg7[%61, %c0_16, %c0_17], %64 {strides = array<i32>} : memref<8x8x32xf32, #tpu.memory_space<vmem>>, vector<1x8x32xf32>,
    %c2_i32 = arith.constant 2 : i32
    %65 = arith.index_cast %c2_i32 : i32 to index
    %c0_18 = arith.constant 0 : index
    %c0_19 = arith.constant 0 : index
    %66 = vector.load %arg0[%65, %c0_18, %c0_19] : memref<8x8x1xf32, #tpu.memory_space<vmem>>, vector<1x8x1xf32>
    %67 = vector.shape_cast %66 : vector<1x8x1xf32> to vector<8x1xf32>
    %68 = vector.broadcast %67 : vector<8x1xf32> to vector<8x128xf32>
    %69 = vector.broadcast %0 : vector<1x128xf32> to vector<8x128xf32>
    %70 = arith.mulf %68, %69 : vector<8x128xf32>
    %71 = arith.addf %70, %4 : vector<8x128xf32>
    %72 = arith.truncf %60 : vector<8x32xf32> to vector<8x32xbf16>
    %cst_20 = arith.constant dense<0.000000e+00> : vector<8x128xf32>
    %73 = tpu.matmul %72, %1, %cst_20 {dimension_numbers = #tpu.dot_dimension_numbers<[1], [0], [0], [1], [0, 0, 1, 1], [], []>} : vector<8x32xbf16>, vector<32x128xbf16>, vector<8x128xf32> -> vector<8x128xf32>
    %74 = arith.addf %71, %73 : vector<8x128xf32>
    %75 = arith.negf %74 : vector<8x128xf32>
    %76 = math.exp %75 : vector<8x128xf32>
    %cst_21 = arith.constant 1.000000e+00 : f32
    %77 = vector.broadcast %cst_21 : f32 to vector<8x128xf32>
    %78 = arith.addf %77, %76 : vector<8x128xf32>
    %79 = arith.divf %77, %78 : vector<8x128xf32>
    %80 = math.tanh %74 : vector<8x128xf32>
    %81 = vector.extract_strided_slice %79 {offsets = [0, 0], sizes = [8, 32], strides = [1, 1]} : vector<8x128xf32> to vector<8x32xf32>
    %82 = vector.extract_strided_slice %79 {offsets = [0, 32], sizes = [8, 32], strides = [1, 1]} : vector<8x128xf32> to vector<8x32xf32>
    %83 = vector.extract_strided_slice %80 {offsets = [0, 64], sizes = [8, 32], strides = [1, 1]} : vector<8x128xf32> to vector<8x32xf32>
    %84 = vector.extract_strided_slice %79 {offsets = [0, 96], sizes = [8, 32], strides = [1, 1]} : vector<8x128xf32> to vector<8x32xf32>
    %85 = arith.mulf %82, %58 : vector<8x32xf32>
    %86 = arith.mulf %81, %83 : vector<8x32xf32>
    %87 = arith.addf %85, %86 : vector<8x32xf32>
    %88 = math.tanh %87 : vector<8x32xf32>
    %89 = arith.mulf %84, %88 : vector<8x32xf32>
    %90 = arith.index_cast %c2_i32 : i32 to index
    %c0_22 = arith.constant 0 : index
    %c0_23 = arith.constant 0 : index
    %91 = vector.load %arg7[%90, %c0_22, %c0_23] : memref<8x8x32xf32, #tpu.memory_space<vmem>>, vector<1x8x32xf32>
    %92 = vector.shape_cast %91 : vector<1x8x32xf32> to vector<8x32xf32>
    %93 = vector.shape_cast %89 : vector<8x32xf32> to vector<1x8x32xf32>
    tpu.vector_store %arg7[%90, %c0_22, %c0_23], %93 {strides = array<i32>} : memref<8x8x32xf32, #tpu.memory_space<vmem>>, vector<1x8x32xf32>,
    %c3_i32 = arith.constant 3 : i32
    %94 = arith.index_cast %c3_i32 : i32 to index
    %c0_24 = arith.constant 0 : index
    %c0_25 = arith.constant 0 : index
    %95 = vector.load %arg0[%94, %c0_24, %c0_25] : memref<8x8x1xf32, #tpu.memory_space<vmem>>, vector<1x8x1xf32>
    %96 = vector.shape_cast %95 : vector<1x8x1xf32> to vector<8x1xf32>
    %97 = vector.broadcast %96 : vector<8x1xf32> to vector<8x128xf32>
    %98 = vector.broadcast %0 : vector<1x128xf32> to vector<8x128xf32>
    %99 = arith.mulf %97, %98 : vector<8x128xf32>
    %100 = arith.addf %99, %4 : vector<8x128xf32>
    %101 = arith.truncf %89 : vector<8x32xf32> to vector<8x32xbf16>
    %cst_26 = arith.constant dense<0.000000e+00> : vector<8x128xf32>
    %102 = tpu.matmul %101, %1, %cst_26 {dimension_numbers = #tpu.dot_dimension_numbers<[1], [0], [0], [1], [0, 0, 1, 1], [], []>} : vector<8x32xbf16>, vector<32x128xbf16>, vector<8x128xf32> -> vector<8x128xf32>
    %103 = arith.addf %100, %102 : vector<8x128xf32>
    %104 = arith.negf %103 : vector<8x128xf32>
    %105 = math.exp %104 : vector<8x128xf32>
    %cst_27 = arith.constant 1.000000e+00 : f32
    %106 = vector.broadcast %cst_27 : f32 to vector<8x128xf32>
    %107 = arith.addf %106, %105 : vector<8x128xf32>
    %108 = arith.divf %106, %107 : vector<8x128xf32>
    %109 = math.tanh %103 : vector<8x128xf32>
    %110 = vector.extract_strided_slice %108 {offsets = [0, 0], sizes = [8, 32], strides = [1, 1]} : vector<8x128xf32> to vector<8x32xf32>
    %111 = vector.extract_strided_slice %108 {offsets = [0, 32], sizes = [8, 32], strides = [1, 1]} : vector<8x128xf32> to vector<8x32xf32>
    %112 = vector.extract_strided_slice %109 {offsets = [0, 64], sizes = [8, 32], strides = [1, 1]} : vector<8x128xf32> to vector<8x32xf32>
    %113 = vector.extract_strided_slice %108 {offsets = [0, 96], sizes = [8, 32], strides = [1, 1]} : vector<8x128xf32> to vector<8x32xf32>
    %114 = arith.mulf %111, %87 : vector<8x32xf32>
    %115 = arith.mulf %110, %112 : vector<8x32xf32>
    %116 = arith.addf %114, %115 : vector<8x32xf32>
    %117 = math.tanh %116 : vector<8x32xf32>
    %118 = arith.mulf %113, %117 : vector<8x32xf32>
    %119 = arith.index_cast %c3_i32 : i32 to index
    %c0_28 = arith.constant 0 : index
    %c0_29 = arith.constant 0 : index
    %120 = vector.load %arg7[%119, %c0_28, %c0_29] : memref<8x8x32xf32, #tpu.memory_space<vmem>>, vector<1x8x32xf32>
    %121 = vector.shape_cast %120 : vector<1x8x32xf32> to vector<8x32xf32>
    %122 = vector.shape_cast %118 : vector<8x32xf32> to vector<1x8x32xf32>
    tpu.vector_store %arg7[%119, %c0_28, %c0_29], %122 {strides = array<i32>} : memref<8x8x32xf32, #tpu.memory_space<vmem>>, vector<1x8x32xf32>,
    %c4_i32 = arith.constant 4 : i32
    %123 = arith.index_cast %c4_i32 : i32 to index
    %c0_30 = arith.constant 0 : index
    %c0_31 = arith.constant 0 : index
    %124 = vector.load %arg0[%123, %c0_30, %c0_31] : memref<8x8x1xf32, #tpu.memory_space<vmem>>, vector<1x8x1xf32>
    %125 = vector.shape_cast %124 : vector<1x8x1xf32> to vector<8x1xf32>
    %126 = vector.broadcast %125 : vector<8x1xf32> to vector<8x128xf32>
    %127 = vector.broadcast %0 : vector<1x128xf32> to vector<8x128xf32>
    %128 = arith.mulf %126, %127 : vector<8x128xf32>
    %129 = arith.addf %128, %4 : vector<8x128xf32>
    %130 = arith.truncf %118 : vector<8x32xf32> to vector<8x32xbf16>
    %cst_32 = arith.constant dense<0.000000e+00> : vector<8x128xf32>
    %131 = tpu.matmul %130, %1, %cst_32 {dimension_numbers = #tpu.dot_dimension_numbers<[1], [0], [0], [1], [0, 0, 1, 1], [], []>} : vector<8x32xbf16>, vector<32x128xbf16>, vector<8x128xf32> -> vector<8x128xf32>
    %132 = arith.addf %129, %131 : vector<8x128xf32>
    %133 = arith.negf %132 : vector<8x128xf32>
    %134 = math.exp %133 : vector<8x128xf32>
    %cst_33 = arith.constant 1.000000e+00 : f32
    %135 = vector.broadcast %cst_33 : f32 to vector<8x128xf32>
    %136 = arith.addf %135, %134 : vector<8x128xf32>
    %137 = arith.divf %135, %136 : vector<8x128xf32>
    %138 = math.tanh %132 : vector<8x128xf32>
    %139 = vector.extract_strided_slice %137 {offsets = [0, 0], sizes = [8, 32], strides = [1, 1]} : vector<8x128xf32> to vector<8x32xf32>
    %140 = vector.extract_strided_slice %137 {offsets = [0, 32], sizes = [8, 32], strides = [1, 1]} : vector<8x128xf32> to vector<8x32xf32>
    %141 = vector.extract_strided_slice %138 {offsets = [0, 64], sizes = [8, 32], strides = [1, 1]} : vector<8x128xf32> to vector<8x32xf32>
    %142 = vector.extract_strided_slice %137 {offsets = [0, 96], sizes = [8, 32], strides = [1, 1]} : vector<8x128xf32> to vector<8x32xf32>
    %143 = arith.mulf %140, %116 : vector<8x32xf32>
    %144 = arith.mulf %139, %141 : vector<8x32xf32>
    %145 = arith.addf %143, %144 : vector<8x32xf32>
    %146 = math.tanh %145 : vector<8x32xf32>
    %147 = arith.mulf %142, %146 : vector<8x32xf32>
    %148 = arith.index_cast %c4_i32 : i32 to index
    %c0_34 = arith.constant 0 : index
    %c0_35 = arith.constant 0 : index
    %149 = vector.load %arg7[%148, %c0_34, %c0_35] : memref<8x8x32xf32, #tpu.memory_space<vmem>>, vector<1x8x32xf32>
    %150 = vector.shape_cast %149 : vector<1x8x32xf32> to vector<8x32xf32>
    %151 = vector.shape_cast %147 : vector<8x32xf32> to vector<1x8x32xf32>
    tpu.vector_store %arg7[%148, %c0_34, %c0_35], %151 {strides = array<i32>} : memref<8x8x32xf32, #tpu.memory_space<vmem>>, vector<1x8x32xf32>,
    %c5_i32 = arith.constant 5 : i32
    %152 = arith.index_cast %c5_i32 : i32 to index
    %c0_36 = arith.constant 0 : index
    %c0_37 = arith.constant 0 : index
    %153 = vector.load %arg0[%152, %c0_36, %c0_37] : memref<8x8x1xf32, #tpu.memory_space<vmem>>, vector<1x8x1xf32>
    %154 = vector.shape_cast %153 : vector<1x8x1xf32> to vector<8x1xf32>
    %155 = vector.broadcast %154 : vector<8x1xf32> to vector<8x128xf32>
    %156 = vector.broadcast %0 : vector<1x128xf32> to vector<8x128xf32>
    %157 = arith.mulf %155, %156 : vector<8x128xf32>
    %158 = arith.addf %157, %4 : vector<8x128xf32>
    %159 = arith.truncf %147 : vector<8x32xf32> to vector<8x32xbf16>
    %cst_38 = arith.constant dense<0.000000e+00> : vector<8x128xf32>
    %160 = tpu.matmul %159, %1, %cst_38 {dimension_numbers = #tpu.dot_dimension_numbers<[1], [0], [0], [1], [0, 0, 1, 1], [], []>} : vector<8x32xbf16>, vector<32x128xbf16>, vector<8x128xf32> -> vector<8x128xf32>
    %161 = arith.addf %158, %160 : vector<8x128xf32>
    %162 = arith.negf %161 : vector<8x128xf32>
    %163 = math.exp %162 : vector<8x128xf32>
    %cst_39 = arith.constant 1.000000e+00 : f32
    %164 = vector.broadcast %cst_39 : f32 to vector<8x128xf32>
    %165 = arith.addf %164, %163 : vector<8x128xf32>
    %166 = arith.divf %164, %165 : vector<8x128xf32>
    %167 = math.tanh %161 : vector<8x128xf32>
    %168 = vector.extract_strided_slice %166 {offsets = [0, 0], sizes = [8, 32], strides = [1, 1]} : vector<8x128xf32> to vector<8x32xf32>
    %169 = vector.extract_strided_slice %166 {offsets = [0, 32], sizes = [8, 32], strides = [1, 1]} : vector<8x128xf32> to vector<8x32xf32>
    %170 = vector.extract_strided_slice %167 {offsets = [0, 64], sizes = [8, 32], strides = [1, 1]} : vector<8x128xf32> to vector<8x32xf32>
    %171 = vector.extract_strided_slice %166 {offsets = [0, 96], sizes = [8, 32], strides = [1, 1]} : vector<8x128xf32> to vector<8x32xf32>
    %172 = arith.mulf %169, %145 : vector<8x32xf32>
    %173 = arith.mulf %168, %170 : vector<8x32xf32>
    %174 = arith.addf %172, %173 : vector<8x32xf32>
    %175 = math.tanh %174 : vector<8x32xf32>
    %176 = arith.mulf %171, %175 : vector<8x32xf32>
    %177 = arith.index_cast %c5_i32 : i32 to index
    %c0_40 = arith.constant 0 : index
    %c0_41 = arith.constant 0 : index
    %178 = vector.load %arg7[%177, %c0_40, %c0_41] : memref<8x8x32xf32, #tpu.memory_space<vmem>>, vector<1x8x32xf32>
    %179 = vector.shape_cast %178 : vector<1x8x32xf32> to vector<8x32xf32>
    %180 = vector.shape_cast %176 : vector<8x32xf32> to vector<1x8x32xf32>
    tpu.vector_store %arg7[%177, %c0_40, %c0_41], %180 {strides = array<i32>} : memref<8x8x32xf32, #tpu.memory_space<vmem>>, vector<1x8x32xf32>,
    %c6_i32 = arith.constant 6 : i32
    %181 = arith.index_cast %c6_i32 : i32 to index
    %c0_42 = arith.constant 0 : index
    %c0_43 = arith.constant 0 : index
    %182 = vector.load %arg0[%181, %c0_42, %c0_43] : memref<8x8x1xf32, #tpu.memory_space<vmem>>, vector<1x8x1xf32>
    %183 = vector.shape_cast %182 : vector<1x8x1xf32> to vector<8x1xf32>
    %184 = vector.broadcast %183 : vector<8x1xf32> to vector<8x128xf32>
    %185 = vector.broadcast %0 : vector<1x128xf32> to vector<8x128xf32>
    %186 = arith.mulf %184, %185 : vector<8x128xf32>
    %187 = arith.addf %186, %4 : vector<8x128xf32>
    %188 = arith.truncf %176 : vector<8x32xf32> to vector<8x32xbf16>
    %cst_44 = arith.constant dense<0.000000e+00> : vector<8x128xf32>
    %189 = tpu.matmul %188, %1, %cst_44 {dimension_numbers = #tpu.dot_dimension_numbers<[1], [0], [0], [1], [0, 0, 1, 1], [], []>} : vector<8x32xbf16>, vector<32x128xbf16>, vector<8x128xf32> -> vector<8x128xf32>
    %190 = arith.addf %187, %189 : vector<8x128xf32>
    %191 = arith.negf %190 : vector<8x128xf32>
    %192 = math.exp %191 : vector<8x128xf32>
    %cst_45 = arith.constant 1.000000e+00 : f32
    %193 = vector.broadcast %cst_45 : f32 to vector<8x128xf32>
    %194 = arith.addf %193, %192 : vector<8x128xf32>
    %195 = arith.divf %193, %194 : vector<8x128xf32>
    %196 = math.tanh %190 : vector<8x128xf32>
    %197 = vector.extract_strided_slice %195 {offsets = [0, 0], sizes = [8, 32], strides = [1, 1]} : vector<8x128xf32> to vector<8x32xf32>
    %198 = vector.extract_strided_slice %195 {offsets = [0, 32], sizes = [8, 32], strides = [1, 1]} : vector<8x128xf32> to vector<8x32xf32>
    %199 = vector.extract_strided_slice %196 {offsets = [0, 64], sizes = [8, 32], strides = [1, 1]} : vector<8x128xf32> to vector<8x32xf32>
    %200 = vector.extract_strided_slice %195 {offsets = [0, 96], sizes = [8, 32], strides = [1, 1]} : vector<8x128xf32> to vector<8x32xf32>
    %201 = arith.mulf %198, %174 : vector<8x32xf32>
    %202 = arith.mulf %197, %199 : vector<8x32xf32>
    %203 = arith.addf %201, %202 : vector<8x32xf32>
    %204 = math.tanh %203 : vector<8x32xf32>
    %205 = arith.mulf %200, %204 : vector<8x32xf32>
    %206 = arith.index_cast %c6_i32 : i32 to index
    %c0_46 = arith.constant 0 : index
    %c0_47 = arith.constant 0 : index
    %207 = vector.load %arg7[%206, %c0_46, %c0_47] : memref<8x8x32xf32, #tpu.memory_space<vmem>>, vector<1x8x32xf32>
    %208 = vector.shape_cast %207 : vector<1x8x32xf32> to vector<8x32xf32>
    %209 = vector.shape_cast %205 : vector<8x32xf32> to vector<1x8x32xf32>
    tpu.vector_store %arg7[%206, %c0_46, %c0_47], %209 {strides = array<i32>} : memref<8x8x32xf32, #tpu.memory_space<vmem>>, vector<1x8x32xf32>,
    %c7_i32 = arith.constant 7 : i32
    %210 = arith.index_cast %c7_i32 : i32 to index
    %c0_48 = arith.constant 0 : index
    %c0_49 = arith.constant 0 : index
    %211 = vector.load %arg0[%210, %c0_48, %c0_49] : memref<8x8x1xf32, #tpu.memory_space<vmem>>, vector<1x8x1xf32>
    %212 = vector.shape_cast %211 : vector<1x8x1xf32> to vector<8x1xf32>
    %213 = vector.broadcast %212 : vector<8x1xf32> to vector<8x128xf32>
    %214 = vector.broadcast %0 : vector<1x128xf32> to vector<8x128xf32>
    %215 = arith.mulf %213, %214 : vector<8x128xf32>
    %216 = arith.addf %215, %4 : vector<8x128xf32>
    %217 = arith.truncf %205 : vector<8x32xf32> to vector<8x32xbf16>
    %cst_50 = arith.constant dense<0.000000e+00> : vector<8x128xf32>
    %218 = tpu.matmul %217, %1, %cst_50 {dimension_numbers = #tpu.dot_dimension_numbers<[1], [0], [0], [1], [0, 0, 1, 1], [], []>} : vector<8x32xbf16>, vector<32x128xbf16>, vector<8x128xf32> -> vector<8x128xf32>
    %219 = arith.addf %216, %218 : vector<8x128xf32>
    %220 = arith.negf %219 : vector<8x128xf32>
    %221 = math.exp %220 : vector<8x128xf32>
    %cst_51 = arith.constant 1.000000e+00 : f32
    %222 = vector.broadcast %cst_51 : f32 to vector<8x128xf32>
    %223 = arith.addf %222, %221 : vector<8x128xf32>
    %224 = arith.divf %222, %223 : vector<8x128xf32>
    %225 = math.tanh %219 : vector<8x128xf32>
    %226 = vector.extract_strided_slice %224 {offsets = [0, 0], sizes = [8, 32], strides = [1, 1]} : vector<8x128xf32> to vector<8x32xf32>
    %227 = vector.extract_strided_slice %224 {offsets = [0, 32], sizes = [8, 32], strides = [1, 1]} : vector<8x128xf32> to vector<8x32xf32>
    %228 = vector.extract_strided_slice %225 {offsets = [0, 64], sizes = [8, 32], strides = [1, 1]} : vector<8x128xf32> to vector<8x32xf32>
    %229 = vector.extract_strided_slice %224 {offsets = [0, 96], sizes = [8, 32], strides = [1, 1]} : vector<8x128xf32> to vector<8x32xf32>
    %230 = arith.mulf %227, %203 : vector<8x32xf32>
    %231 = arith.mulf %226, %228 : vector<8x32xf32>
    %232 = arith.addf %230, %231 : vector<8x32xf32>
    %233 = math.tanh %232 : vector<8x32xf32>
    %234 = arith.mulf %229, %233 : vector<8x32xf32>
    %235 = arith.index_cast %c7_i32 : i32 to index
    %c0_52 = arith.constant 0 : index
    %c0_53 = arith.constant 0 : index
    %236 = vector.load %arg7[%235, %c0_52, %c0_53] : memref<8x8x32xf32, #tpu.memory_space<vmem>>, vector<1x8x32xf32>
    %237 = vector.shape_cast %236 : vector<1x8x32xf32> to vector<8x32xf32>
    %238 = vector.shape_cast %234 : vector<8x32xf32> to vector<1x8x32xf32>
    tpu.vector_store %arg7[%235, %c0_52, %c0_53], %238 {strides = array<i32>} : memref<8x8x32xf32, #tpu.memory_space<vmem>>, vector<1x8x32xf32>,
    %c8_i32 = arith.constant 8 : i32
    %c0_54 = arith.constant 0 : index
    %c0_55 = arith.constant 0 : index
    %c0_56 = arith.constant 0 : index
    %239 = vector.load %arg7[%c0_54, %c0_55, %c0_56] : memref<8x8x32xf32, #tpu.memory_space<vmem>>, vector<8x8x32xf32>
    %c0_57 = arith.constant 0 : index
    %c0_58 = arith.constant 0 : index
    %240 = vector.load %arg4[%c0_57, %c0_58] : memref<1x32xf32, #tpu.memory_space<vmem>>, vector<1x32xf32>
    %241 = vector.shape_cast %240 : vector<1x32xf32> to vector<1x1x32xf32>
    %242 = vector.broadcast %241 : vector<1x1x32xf32> to vector<8x8x32xf32>
    %243 = arith.mulf %239, %242 : vector<8x8x32xf32>
    %cst_59 = arith.constant dense<0.000000e+00> : vector<8x8xf32>
    %244 = vector.multi_reduction <add>, %243, %cst_59 [2] : vector<8x8x32xf32> to vector<8x8xf32>
    %c0_60 = arith.constant 0 : index
    %245 = memref.load %arg5[%c0_60] : memref<1xf32, #tpu.memory_space<smem>>
    %246 = vector.broadcast %245 : f32 to vector<8x8xf32>
    %247 = arith.addf %244, %246 : vector<8x8xf32>
    %c0_61 = arith.constant 0 : index
    %c0_62 = arith.constant 0 : index
    %248 = vector.load %arg6[%c0_61, %c0_62] : memref<8x8xf32, #tpu.memory_space<vmem>>, vector<8x8xf32>
    tpu.vector_store %arg6[%c0_61, %c0_62], %247 {strides = array<i32>} : memref<8x8xf32, #tpu.memory_space<vmem>>, vector<8x8xf32>,
    return
  }
}

</mosaic_0001>

<bundles_post_ra>
// kernel: tpu_custom_call.1
= control target key start
LH: loop header
LB: loop body
LE: loop exit
PB: predicated region body
PF: predicated region fallthrough
CT: control target
= control target key end

     0   :  { %v1090_v1 = vmov 0.0   ;;  %vm1091_vm0 = vmmov 0   ;;  %s1349_s0 = inlined_call_operand.vmem [shape: f32[8,8,1], index: 0, kind: input, shape index: {}]   ;;  %s1350_s1 = inlined_call_operand.vmem [shape: f32[1,128], index: 1, kind: input, shape index: {}]   ;;  %s1351_s2 = inlined_call_operand.vmem [shape: bf16[32,128], index: 2, kind: input, shape index: {}]   ;;  %s1352_s3 = inlined_call_operand.vmem [shape: f32[1,128], index: 3, kind: input, shape index: {}]   ;;  %s1353_s4 = inlined_call_operand.vmem [shape: f32[1,32], index: 4, kind: input, shape index: {}]   ;;  %s1354_s5 = inlined_call_operand.<no memory space> [shape: f32[1], index: 5, kind: input, shape index: {}]   ;;  %s1355_s6 = inlined_call_operand.hbm [shape: f32[8,8], index: 6, kind: output, shape index: {}]  }
   0x1   :  { %v1134_v0 = vld [vmem:[%s1351_s2] sm:$0xff]   ;;  %928 = vmatprep.subr.bf16.mxu0 %v1090_v1  ;;  %936 = vmatprep.subr.bf16.mxu1 %v1090_v1  ;;  %v1142_v2 = vld [vmem:[%s1351_s2 + $0x8] sm:$0xff]  }
   0x2   :  { %929 = vmatpush3.bf16.msra.mxu0 %v1134_v0  ;;  %932 = vmatprep.mubr.msk.bf16.mxu0 %vm1091_vm0, %v1090_v1  ;;  %v38_v3 = vld [vmem:[%s1349_s0] sm:$0xff] }
   0x3   :  { %12 = vsyncpa [#allocation5], 0  ;;  %930 = vmatprep.subr.bf16.mxu0 %v1090_v1  ;;  %v1092_v4 = vmov 0   ;;  %937 = vmatpush3.bf16.msra.mxu1 %v1134_v0  ;;  %v1167_v6 = vld [vmem:[%s1350_s1] ss:$0 sm:$0xff]  ;;  %s1093_s30 = smov 64  }
   0x4   :  { %998 = vset.pattern.permute.xlu0 %v1092_v4  ;;  %938 = vmatprep.subr.bf16.mxu1 %v1090_v1  ;;  %v1173_v8 = vld [vmem:[%s1352_s3] ss:$0 sm:$0xff]  ;;  %s1094_s1 = smov 32   ;;  %v882_v26 = vld [vmem:[%s1349_s0 + $0x8] sm:$0xff]  ;;  %vm64_vm1 = vcmask 261120   ;;  %v885_v50 = vld [vmem:[%s1349_s0 + $0x10] sm:$0xff] }
   0x5   :  { %41 = vperm.xlu0 %998, %v38_v3   ;;  %940 = vmatprep.mubr.msk.bf16.mxu1 %vm1091_vm0, %v1090_v1  ;;  %vm846_vm2 = vcmask 1041409   ;;  %vm848_vm3 = vcmask 1042434   ;;  %vm850_vm4 = vcmask 1043459   ;;  %vm852_vm5 = vcmask 1044484  }
   0x6   :  { %931 = vmatpush3.bf16.msra.mxu0 %v1142_v2  ;;  %999 = vset.pattern.permute.xlu1 %v1092_v4  ;;  %vm854_vm6 = vcmask 1045509   ;;  %vm856_vm7 = vcmask 1046534   ;;  %vm858_vm8 = vcmask 1047559   ;;  %vm861_vm9 = vcmask 64512  }
   0x7   :  { %944 = vmatprep.subr.bf16.mxu0 %v1090_v1  ;;  %939 = vmatpush3.bf16.msra.mxu1 %v1142_v2 }
   0x8   :  { %952 = vmatprep.subr.bf16.mxu1 %v1090_v1 }
   0x9   :  { %933 = vmatmul.mubr.bf16.vlgmr.msra.gmra.mrb[0].mxu0 %v1092_v4 }
   0xa   :  { %945 = vmatpush3.bf16.msra.mxu0 %v1134_v0  ;;  %948 = vmatprep.mubr.msk.bf16.mxu0 %vm1091_vm0, %v1090_v1 }
   0xb   :  { %946 = vmatprep.subr.bf16.mxu0 %v1090_v1 }
   0xe   :  { %947 = vmatpush3.bf16.msra.mxu0 %v1142_v2 }
   0xf   :  { %960 = vmatprep.subr.bf16.mxu0 %v1090_v1 }
  0x84   :  { %v42_v5 = vpop.permute.xlu0 %41 }
  0x85   :  { %v50_v7 = vmul.f32 %v1167_v6, %v42_v5 }
  0x87   :  { %v51_v9 = vadd.f32 %v1173_v8, %v50_v7 }
  0xdc   :  { %v102_v10 = vpop.f32.mrb[0].mxu0 }
  0xdd   :  { %v108_v11 = vadd.f32 %v102_v10, %v51_v9  ;;  %v934_v12 = vpop.f32.mrb[1].mxu0 }
  0xde   :  { %v105_v13 = vpop.f32.mrb[2].mxu0 }
  0xdf   :  { %1002 = vtanh.f32 %v108_v11  ;;  %v935_v14 = vpop.f32.mrb[3].mxu0  ;;  %v881_v16 = vmul.f32 -1.442695, %v108_v11 }
  0xe1   :  { %1004 = vpow2.f32 %v881_v16 }
  0xe9   :  { %v1003_v15 = vpop.eup %1002 }
  0xea   :  { %118 = vrot.lane.b32.xlu0 %v1003_v15, %s1093_s30  ;;  %v888_v15 = vld [vmem:[%s1349_s0 + $0x18] sm:$0xff] }
  0xeb   :  { %v1005_v17 = vpop.eup %1004 }
  0xec   :  { %v112_v18 = vadd.f32 1.0, %v1005_v17 }
  0xee   :  { %1006 = vrcp.f32 %v112_v18 }
  0xf8   :  { %v1007_v19 = vpop.eup %1006 }
  0xf9   :  { %v116_v22 = vmul.f32 0.0, %v1007_v19 }
 0x15c   :  { %v119_v20 = vpop.permute.xlu0 %118 }
 0x15d   :  { %v121_v21 = vmul.f32 %v1007_v19, %v119_v20 }
 0x15f   :  { %123 = vrot.lane.b32.xlu1 %v121_v21, %s1094_s1 }
 0x1d1   :  { %v124_v23 = vpop.permute.xlu1 %123 }
 0x1d2   :  { %v126_v24 = vadd.f32 %v124_v23, %v116_v22 }
 0x1d4   :  { %1008 = vtanh.f32 %v126_v24 }
 0x1de   :  { %v1009_v25 = vpop.eup %1008 }
 0x1df   :  { %129 = vrot.lane.b32.xlu1 %v1009_v25, %s1093_s30 }
 0x1e3   :  { %142 = vperm.xlu1 %999, %v882_v26  }
 0x251   :  { %v130_v27 = vpop.permute.xlu1 %129 }
 0x252   :  { %v1182_v28 = vmul.f32 %v1007_v19, %v130_v27 }
 0x254   :  { %v147_v29 = vpack.c.bf16 %v1182_v28, %v1182_v28 }
 0x256   :  { %149 = vrot.lane.b32.xlu0 %v147_v29, %s1094_s1 }
 0x262   :  { %v143_v31 = vpop.permute.xlu1 %142 }
 0x263   :  { %v145_v32 = vmul.f32 %v1167_v6, %v143_v31 }
 0x265   :  { %v146_v33 = vadd.f32 %v1173_v8, %v145_v32 }
 0x2c8   :  { %v150_v30 = vpop.permute.xlu0 %149 }
 0x2c9   :  { %941 = vmatmul.mubr.msk.bf16.vlgmr.msra.gmra.mrb[0].mxu1 %vm64_vm1, %v150_v30 }
 0x2ca   :  { %953 = vmatpush3.bf16.msra.mxu1 %v1134_v0  ;;  %956 = vmatprep.mubr.msk.bf16.mxu1 %vm1091_vm0, %v1090_v1 }
 0x2cb   :  { %954 = vmatprep.subr.bf16.mxu1 %v1090_v1 }
 0x2ce   :  { %955 = vmatpush3.bf16.msra.mxu1 %v1142_v2 }
 0x2cf   :  { %968 = vmatprep.subr.bf16.mxu1 %v1090_v1 }
 0x39c   :  { %v188_v34 = vpop.f32.mrb[0].mxu1 }
 0x39d   :  { %v194_v35 = vadd.f32 %v188_v34, %v146_v33  ;;  %v942_v36 = vpop.f32.mrb[1].mxu1 }
 0x39e   :  { %v191_v37 = vpop.f32.mrb[2].mxu1 }
 0x39f   :  { %1010 = vtanh.f32 %v194_v35  ;;  %v943_v38 = vpop.f32.mrb[3].mxu1  ;;  %v884_v40 = vmul.f32 -1.442695, %v194_v35 }
 0x3a1   :  { %1012 = vpow2.f32 %v884_v40  ;;  %v891_v40 = vld [vmem:[%s1349_s0 + $0x20] sm:$0xff] }
 0x3a9   :  { %v1011_v39 = vpop.eup %1010 }
 0x3aa   :  { %204 = vrot.lane.b32.xlu0 %v1011_v39, %s1093_s30 }
 0x3ab   :  { %v1013_v41 = vpop.eup %1012 }
 0x3ac   :  { %v198_v42 = vadd.f32 1.0, %v1013_v41 }
 0x3ae   :  { %1014 = vrcp.f32 %v198_v42 }
 0x3b8   :  { %v1015_v43 = vpop.eup %1014 }
 0x3b9   :  { %v202_v46 = vmul.f32 %v1015_v43, %v126_v24 }
 0x41c   :  { %v205_v44 = vpop.permute.xlu0 %204 }
 0x41d   :  { %v207_v45 = vmul.f32 %v1015_v43, %v205_v44 }
 0x41f   :  { %209 = vrot.lane.b32.xlu1 %v207_v45, %s1094_s1 }
 0x491   :  { %v210_v47 = vpop.permute.xlu1 %209 }
 0x492   :  { %v212_v48 = vadd.f32 %v210_v47, %v202_v46 }
 0x494   :  { %1016 = vtanh.f32 %v212_v48 }
 0x49e   :  { %v1017_v49 = vpop.eup %1016 }
 0x49f   :  { %215 = vrot.lane.b32.xlu0 %v1017_v49, %s1093_s30 }
 0x4a3   :  { %229 = vperm.xlu0 %998, %v885_v50  }
 0x511   :  { %v216_v51 = vpop.permute.xlu0 %215 }
 0x512   :  { %v1202_v52 = vmul.f32 %v1015_v43, %v216_v51 }
 0x514   :  { %v234_v53 = vpack.c.bf16 %v1202_v52, %v1202_v52 }
 0x516   :  { %236 = vrot.lane.b32.xlu1 %v234_v53, %s1094_s1 }
 0x522   :  { %v230_v55 = vpop.permute.xlu0 %229 }
 0x523   :  { %v232_v56 = vmul.f32 %v1167_v6, %v230_v55 }
 0x525   :  { %v233_v57 = vadd.f32 %v1173_v8, %v232_v56 }
 0x588   :  { %v237_v54 = vpop.permute.xlu1 %236 }
 0x589   :  { %949 = vmatmul.mubr.msk.bf16.vlgmr.msra.gmra.mrb[4].mxu0 %vm64_vm1, %v237_v54 }
 0x58a   :  { %961 = vmatpush3.bf16.msra.mxu0 %v1134_v0  ;;  %964 = vmatprep.mubr.msk.bf16.mxu0 %vm1091_vm0, %v1090_v1 }
 0x58b   :  { %962 = vmatprep.subr.bf16.mxu0 %v1090_v1 }
 0x58e   :  { %963 = vmatpush3.bf16.msra.mxu0 %v1142_v2 }
 0x58f   :  { %976 = vmatprep.subr.bf16.mxu0 %v1090_v1 }
 0x65c   :  { %v275_v58 = vpop.f32.mrb[4].mxu0 }
 0x65d   :  { %v281_v59 = vadd.f32 %v275_v58, %v233_v57  ;;  %v950_v60 = vpop.f32.mrb[5].mxu0 }
 0x65e   :  { %v278_v61 = vpop.f32.mrb[6].mxu0 }
 0x65f   :  { %1018 = vtanh.f32 %v281_v59  ;;  %v951_v62 = vpop.f32.mrb[7].mxu0  ;;  %v887_v3 = vmul.f32 -1.442695, %v281_v59 }
 0x661   :  { %1020 = vpow2.f32 %v887_v3 }
 0x669   :  { %v1019_v63 = vpop.eup %1018 }
 0x66a   :  { %291 = vrot.lane.b32.xlu1 %v1019_v63, %s1093_s30 }
 0x66b   :  { %v1021_v4 = vpop.eup %1020 }
 0x66c   :  { %v285_v5 = vadd.f32 1.0, %v1021_v4  ;;  %v894_v4 = vld [vmem:[%s1349_s0 + $0x28] sm:$0xff] }
 0x66e   :  { %1022 = vrcp.f32 %v285_v5 }
 0x678   :  { %v1023_v7 = vpop.eup %1022 }
 0x679   :  { %v289_v11 = vmul.f32 %v1023_v7, %v212_v48 }
 0x6dc   :  { %v292_v9 = vpop.permute.xlu1 %291 }
 0x6dd   :  { %v294_v10 = vmul.f32 %v1023_v7, %v292_v9 }
 0x6df   :  { %296 = vrot.lane.b32.xlu0 %v294_v10, %s1094_s1 }
 0x751   :  { %v297_v12 = vpop.permute.xlu0 %296 }
 0x752   :  { %v299_v13 = vadd.f32 %v297_v12, %v289_v11 }
 0x754   :  { %1024 = vtanh.f32 %v299_v13 }
 0x75e   :  { %v1025_v14 = vpop.eup %1024 }
 0x75f   :  { %302 = vrot.lane.b32.xlu1 %v1025_v14, %s1093_s30 }
 0x763   :  { %316 = vperm.xlu1 %999, %v888_v15  }
 0x7d1   :  { %v303_v16 = vpop.permute.xlu1 %302 }
 0x7d2   :  { %v1222_v17 = vmul.f32 %v1023_v7, %v303_v16 }
 0x7d4   :  { %v321_v18 = vpack.c.bf16 %v1222_v17, %v1222_v17 }
 0x7d6   :  { %323 = vrot.lane.b32.xlu0 %v321_v18, %s1094_s1 }
 0x7e2   :  { %v317_v20 = vpop.permute.xlu1 %316 }
 0x7e3   :  { %v319_v21 = vmul.f32 %v1167_v6, %v317_v20 }
 0x7e5   :  { %v320_v22 = vadd.f32 %v1173_v8, %v319_v21 }
 0x848   :  { %v324_v19 = vpop.permute.xlu0 %323 }
 0x849   :  { %957 = vmatmul.mubr.msk.bf16.vlgmr.msra.gmra.mrb[4].mxu1 %vm64_vm1, %v324_v19 }
 0x84a   :  { %969 = vmatpush3.bf16.msra.mxu1 %v1134_v0  ;;  %972 = vmatprep.mubr.msk.bf16.mxu1 %vm1091_vm0, %v1090_v1 }
 0x84b   :  { %970 = vmatprep.subr.bf16.mxu1 %v1090_v1 }
 0x84e   :  { %971 = vmatpush3.bf16.msra.mxu1 %v1142_v2 }
 0x84f   :  { %984 = vmatprep.subr.bf16.mxu1 %v1090_v1 }
 0x91c   :  { %v362_v23 = vpop.f32.mrb[4].mxu1 }
 0x91d   :  { %v368_v24 = vadd.f32 %v362_v23, %v320_v22  ;;  %v958_v25 = vpop.f32.mrb[5].mxu1 }
 0x91e   :  { %v365_v26 = vpop.f32.mrb[6].mxu1 }
 0x91f   :  { %1026 = vtanh.f32 %v368_v24  ;;  %v959_v27 = vpop.f32.mrb[7].mxu1  ;;  %v890_v30 = vmul.f32 -1.442695, %v368_v24 }
 0x921   :  { %1028 = vpow2.f32 %v890_v30 }
 0x929   :  { %v1027_v29 = vpop.eup %1026 }
 0x92a   :  { %378 = vrot.lane.b32.xlu0 %v1027_v29, %s1093_s30  ;;  %v897_v29 = vld [vmem:[%s1349_s0 + $0x30] sm:$0xff] }
 0x92b   :  { %v1029_v31 = vpop.eup %1028 }
 0x92c   :  { %v372_v32 = vadd.f32 1.0, %v1029_v31 }
 0x92e   :  { %1030 = vrcp.f32 %v372_v32 }
 0x938   :  { %v1031_v33 = vpop.eup %1030 }
 0x939   :  { %v376_v36 = vmul.f32 %v1031_v33, %v299_v13 }
 0x99c   :  { %v379_v34 = vpop.permute.xlu0 %378 }
 0x99d   :  { %v381_v35 = vmul.f32 %v1031_v33, %v379_v34 }
 0x99f   :  { %383 = vrot.lane.b32.xlu1 %v381_v35, %s1094_s1 }
 0xa11   :  { %v384_v37 = vpop.permute.xlu1 %383 }
 0xa12   :  { %v386_v38 = vadd.f32 %v384_v37, %v376_v36 }
 0xa14   :  { %1032 = vtanh.f32 %v386_v38 }
 0xa1e   :  { %v1033_v39 = vpop.eup %1032 }
 0xa1f   :  { %389 = vrot.lane.b32.xlu0 %v1033_v39, %s1093_s30 }
 0xa23   :  { %403 = vperm.xlu0 %998, %v891_v40  }
 0xa91   :  { %v390_v41 = vpop.permute.xlu0 %389 }
 0xa92   :  { %v1242_v42 = vmul.f32 %v1031_v33, %v390_v41 }
 0xa94   :  { %v408_v43 = vpack.c.bf16 %v1242_v42, %v1242_v42 }
 0xa96   :  { %410 = vrot.lane.b32.xlu1 %v408_v43, %s1094_s1 }
 0xaa2   :  { %v404_v45 = vpop.permute.xlu0 %403 }
 0xaa3   :  { %v406_v46 = vmul.f32 %v1167_v6, %v404_v45 }
 0xaa5   :  { %v407_v47 = vadd.f32 %v1173_v8, %v406_v46 }
 0xb08   :  { %v411_v44 = vpop.permute.xlu1 %410 }
 0xb09   :  { %965 = vmatmul.mubr.msk.bf16.vlgmr.msra.gmra.mrb[8].mxu0 %vm64_vm1, %v411_v44 }
 0xb0a   :  { %977 = vmatpush3.bf16.msra.mxu0 %v1134_v0  ;;  %980 = vmatprep.mubr.msk.bf16.mxu0 %vm1091_vm0, %v1090_v1 }
 0xb0b   :  { %978 = vmatprep.subr.bf16.mxu0 %v1090_v1 }
 0xb0e   :  { %979 = vmatpush3.bf16.msra.mxu0 %v1142_v2 }
 0xbdc   :  { %v449_v48 = vpop.f32.mrb[8].mxu0 }
 0xbdd   :  { %v455_v49 = vadd.f32 %v449_v48, %v407_v47  ;;  %v966_v50 = vpop.f32.mrb[9].mxu0 }
 0xbde   :  { %v452_v51 = vpop.f32.mrb[10].mxu0 }
 0xbdf   :  { %1034 = vtanh.f32 %v455_v49  ;;  %v967_v53 = vpop.f32.mrb[11].mxu0  ;;  %v893_v55 = vmul.f32 -1.442695, %v455_v49 }
 0xbe1   :  { %1036 = vpow2.f32 %v893_v55  ;;  %v900_v55 = vld [vmem:[%s1349_s0 + $0x38] sm:$0xff] }
 0xbe9   :  { %v1035_v54 = vpop.eup %1034 }
 0xbea   :  { %465 = vrot.lane.b32.xlu1 %v1035_v54, %s1093_s30 }
 0xbeb   :  { %v1037_v56 = vpop.eup %1036 }
 0xbec   :  { %v459_v57 = vadd.f32 1.0, %v1037_v56 }
 0xbee   :  { %1038 = vrcp.f32 %v459_v57 }
 0xbf8   :  { %v1039_v58 = vpop.eup %1038 }
 0xbf9   :  { %v463_v61 = vmul.f32 %v1039_v58, %v386_v38 }
 0xc5c   :  { %v466_v59 = vpop.permute.xlu1 %465 }
 0xc5d   :  { %v468_v60 = vmul.f32 %v1039_v58, %v466_v59 }
 0xc5f   :  { %470 = vrot.lane.b32.xlu0 %v468_v60, %s1094_s1 }
 0xcd1   :  { %v471_v62 = vpop.permute.xlu0 %470 }
 0xcd2   :  { %v473_v63 = vadd.f32 %v471_v62, %v463_v61 }
 0xcd4   :  { %1040 = vtanh.f32 %v473_v63 }
 0xcde   :  { %v1041_v3 = vpop.eup %1040 }
 0xcdf   :  { %476 = vrot.lane.b32.xlu1 %v1041_v3, %s1093_s30 }
 0xce3   :  { %490 = vperm.xlu1 %999, %v894_v4  }
 0xd51   :  { %v477_v5 = vpop.permute.xlu1 %476 }
 0xd52   :  { %v1261_v7 = vmul.f32 %v1039_v58, %v477_v5 }
 0xd54   :  { %v495_v9 = vpack.c.bf16 %v1261_v7, %v1261_v7 }
 0xd56   :  { %497 = vrot.lane.b32.xlu0 %v495_v9, %s1094_s1 }
 0xd62   :  { %v491_v11 = vpop.permute.xlu1 %490 }
 0xd63   :  { %v493_v12 = vmul.f32 %v1167_v6, %v491_v11 }
 0xd65   :  { %v494_v13 = vadd.f32 %v1173_v8, %v493_v12 }
 0xdc8   :  { %v498_v10 = vpop.permute.xlu0 %497 }
 0xdc9   :  { %973 = vmatmul.mubr.msk.bf16.vlgmr.msra.gmra.mrb[8].mxu1 %vm64_vm1, %v498_v10 }
 0xdca   :  { %985 = vmatpush3.bf16.msra.mxu1 %v1134_v0  ;;  %988 = vmatprep.mubr.msk.bf16.mxu1 %vm1091_vm0, %v1090_v1 }
 0xdcb   :  { %986 = vmatprep.subr.bf16.mxu1 %v1090_v1 }
 0xdce   :  { %987 = vmatpush3.bf16.msra.mxu1 %v1142_v2 }
 0xe9c   :  { %v536_v14 = vpop.f32.mrb[8].mxu1 }
 0xe9d   :  { %v542_v15 = vadd.f32 %v536_v14, %v494_v13  ;;  %v974_v16 = vpop.f32.mrb[9].mxu1 }
 0xe9e   :  { %v539_v18 = vpop.f32.mrb[10].mxu1 }
 0xe9f   :  { %1042 = vtanh.f32 %v542_v15  ;;  %v975_v19 = vpop.f32.mrb[11].mxu1  ;;  %v896_v0 = vmul.f32 -1.442695, %v542_v15 }
 0xea1   :  { %1044 = vpow2.f32 %v896_v0 }
 0xea9   :  { %v1043_v20 = vpop.eup %1042 }
 0xeaa   :  { %552 = vrot.lane.b32.xlu0 %v1043_v20, %s1093_s30 }
 0xeab   :  { %v1045_v21 = vpop.eup %1044 }
 0xeac   :  { %v546_v1 = vadd.f32 1.0, %v1045_v21 }
 0xeae   :  { %1046 = vrcp.f32 %v546_v1 }
 0xeb8   :  { %v1047_v2 = vpop.eup %1046 }
 0xeb9   :  { %v550_v24 = vmul.f32 %v1047_v2, %v473_v63 }
 0xf1c   :  { %v553_v22 = vpop.permute.xlu0 %552 }
 0xf1d   :  { %v555_v23 = vmul.f32 %v1047_v2, %v553_v22 }
 0xf1f   :  { %557 = vrot.lane.b32.xlu1 %v555_v23, %s1094_s1 }
 0xf91   :  { %v558_v25 = vpop.permute.xlu1 %557 }
 0xf92   :  { %v560_v26 = vadd.f32 %v558_v25, %v550_v24 }
 0xf94   :  { %1048 = vtanh.f32 %v560_v26 }
 0xf9e   :  { %v1049_v27 = vpop.eup %1048 }
 0xf9f   :  { %563 = vrot.lane.b32.xlu0 %v1049_v27, %s1093_s30 }
 0xfa3   :  { %577 = vperm.xlu0 %998, %v897_v29  }
0x1011   :  { %v564_v30 = vpop.permute.xlu0 %563 }
0x1012   :  { %v1280_v31 = vmul.f32 %v1047_v2, %v564_v30 }
0x1014   :  { %v582_v32 = vpack.c.bf16 %v1280_v31, %v1280_v31 }
0x1016   :  { %584 = vrot.lane.b32.xlu1 %v582_v32, %s1094_s1 }
0x1022   :  { %v578_v34 = vpop.permute.xlu0 %577 }
0x1023   :  { %v580_v35 = vmul.f32 %v1167_v6, %v578_v34 }
0x1025   :  { %v581_v36 = vadd.f32 %v1173_v8, %v580_v35 }
0x1088   :  { %v585_v33 = vpop.permute.xlu1 %584 }
0x1089   :  { %981 = vmatmul.mubr.msk.bf16.vlgmr.msra.gmra.mrb[12].mxu0 %vm64_vm1, %v585_v33 }
0x115c   :  { %v623_v37 = vpop.f32.mrb[12].mxu0 }
0x115d   :  { %v629_v38 = vadd.f32 %v623_v37, %v581_v36  ;;  %v982_v39 = vpop.f32.mrb[13].mxu0 }
0x115e   :  { %v626_v40 = vpop.f32.mrb[14].mxu0 }
0x115f   :  { %1050 = vtanh.f32 %v629_v38  ;;  %v983_v41 = vpop.f32.mrb[15].mxu0  ;;  %v899_v44 = vmul.f32 -1.442695, %v629_v38 }
0x1161   :  { %1052 = vpow2.f32 %v899_v44 }
0x1169   :  { %v1051_v43 = vpop.eup %1050 }
0x116a   :  { %639 = vrot.lane.b32.xlu1 %v1051_v43, %s1093_s30 }
0x116b   :  { %v1053_v45 = vpop.eup %1052 }
0x116c   :  { %v633_v46 = vadd.f32 1.0, %v1053_v45 }
0x116e   :  { %1054 = vrcp.f32 %v633_v46 }
0x1178   :  { %v1055_v47 = vpop.eup %1054 }
0x1179   :  { %v637_v50 = vmul.f32 %v1055_v47, %v560_v26 }
0x11dc   :  { %v640_v48 = vpop.permute.xlu1 %639 }
0x11dd   :  { %v642_v49 = vmul.f32 %v1055_v47, %v640_v48 }
0x11df   :  { %644 = vrot.lane.b32.xlu0 %v642_v49, %s1094_s1 }
0x1251   :  { %v645_v51 = vpop.permute.xlu0 %644 }
0x1252   :  { %v647_v53 = vadd.f32 %v645_v51, %v637_v50  ;;  %v812_v50 = vlaneseq }
0x1254   :  { %1056 = vtanh.f32 %v647_v53 }
0x125e   :  { %v1057_v54 = vpop.eup %1056 }
0x125f   :  { %650 = vrot.lane.b32.xlu1 %v1057_v54, %s1093_s30  ;;  %v813_v54 = vand.u32 127, %v812_v50 }
0x1263   :  { %664 = vperm.xlu1 %999, %v900_v55   ;;  %v815_v55 = vshrl.u32 %v812_v50, 7 }
0x12d1   :  { %v651_v56 = vpop.permute.xlu1 %650 }
0x12d2   :  { %v653_v57 = vmul.f32 %v1055_v47, %v651_v56  ;;  %v795_v56 = vstv %s1354_s5  ;;  %s1095_s5 = smov [#allocation4]  }
0x12d3   :  { %s869_s22 = sshll.u32 %s1095_s5, 4  ;;  %s870_s22 = int_to_ptr.vmem [resolvable:$true] %s869_s22 }
0x12d4   :  { %v669_v58 = vpack.c.bf16 %v653_v57, %v653_v57  ;;  %s1066_s23 = scalar_lea.vmem %s870_s22, 128  ;;  %p1071_p1 = scmp.lt.s32.totalorder %s870_s22, %s870_s22 }
0x12d5   :  { %p1067_p0 = scmp.ne.s32.totalorder %s870_s22, %s1066_s23  ;;  %p1072_p2 = scmp.lt.s32.totalorder %s1066_s23, %s1066_s23 }
0x12d6   :  { %671 = vrot.lane.b32.xlu0 %v669_v58, %s1094_s1 }
0x12d7   :  { %p1073_p3 = por %p1072_p2, %p1071_p1 }
0x12d9   :  { %p1074_p4 = pnand %p1073_p3, %p1067_p0 }
0x12e2   :  { %v665_v60 = vpop.permute.xlu1 %664 }
0x12e3   :  { %v667_v61 = vmul.f32 %v1167_v6, %v665_v60 }
0x12e5   :  { %v668_v62 = vadd.f32 %v1173_v8, %v667_v61  ;;  %v816_v61 = vsub.s32 %v813_v54, %v815_v55 }
0x1348   :  { %v672_v59 = vpop.permute.xlu0 %671 }
0x1349   :  { %989 = vmatmul.mubr.msk.bf16.vlgmr.msra.gmra.mrb[12].mxu1 %vm64_vm1, %v672_v59 }
0x141c   :  { %v710_v63 = vpop.f32.mrb[12].mxu1 }
0x141d   :  { %v716_v3 = vadd.f32 %v710_v63, %v668_v62  ;;  %v990_v4 = vpop.f32.mrb[13].mxu1 }
0x141e   :  { %v713_v5 = vpop.f32.mrb[14].mxu1 }
0x141f   :  { %1058 = vtanh.f32 %v716_v3  ;;  %v991_v9 = vpop.f32.mrb[15].mxu1  ;;  %v902_v11 = vmul.f32 -1.442695, %v716_v3 }
0x1421   :  { %1060 = vpow2.f32 %v902_v11 }
0x1429   :  { %v1059_v10 = vpop.eup %1058 }
0x142a   :  { %726 = vrot.lane.b32.xlu0 %v1059_v10, %s1093_s30 }
0x142b   :  { %v1061_v12 = vpop.eup %1060 }
0x142c   :  { %v720_v13 = vadd.f32 1.0, %v1061_v12 }
0x142e   :  { %1062 = vrcp.f32 %v720_v13 }
0x1438   :  { %v1063_v14 = vpop.eup %1062 }
0x1439   :  { %v724_v6 = vmul.f32 %v1063_v14, %v647_v53 }
0x149c   :  { %v727_v15 = vpop.permute.xlu0 %726 }
0x149d   :  { %v729_v16 = vmul.f32 %v1063_v14, %v727_v15 }
0x149f   :  { %731 = vrot.lane.b32.xlu1 %v729_v16, %s1094_s1 }
0x14a3   :  { %134 = vrot.lane.b32.xlu1 %v1182_v28, %s1094_s1  ;;  %v903_v28 = vld [vmem:[%s1353_s4] ss:$0 sm:$0xff] }
0x14a7   :  { %307 = vrot.lane.b32.xlu1 %v1222_v17, %s1094_s1 }
0x14ab   :  { %481 = vrot.lane.b32.xlu1 %v1261_v7, %s1094_s1 }
0x14af   :  { %655 = vrot.lane.b32.xlu1 %v653_v57, %s1094_s1 }
0x1511   :  { %v732_v8 = vpop.permute.xlu1 %731 }
0x1512   :  { %v734_v18 = vadd.f32 %v732_v8, %v724_v6 }
0x1514   :  { %1064 = vtanh.f32 %v734_v18 }
0x1515   :  { %v135_v19 = vpop.permute.xlu1 %134 }
0x1516   :  { %137 = vst.msk [vmem:[#allocation2] sm:$0xff] %vm64_vm1, %v135_v19 }
0x1519   :  { %v308_v20 = vpop.permute.xlu1 %307 }
0x151a   :  { %311 = vst.msk [vmem:[#allocation2 + $0x10] sm:$0xff] %vm64_vm1, %v308_v20 }
0x151d   :  { %v482_v17 = vpop.permute.xlu1 %481  ;;  %v747_v0 = vld [vmem:[#allocation2] sm:$0xff] }
0x151e   :  { %v1065_v21 = vpop.eup %1064  ;;  %485 = vst.msk [vmem:[#allocation2 + $0x20] sm:$0xff] %vm64_vm1, %v482_v17  ;;  %v762_v7 = vmul.f32 %v903_v28, %v747_v0 }
0x151f   :  { %737 = vrot.lane.b32.xlu0 %v1065_v21, %s1093_s30 }
0x1520   :  { %v770_v1 = vsel %vm64_vm1, %v762_v7, 0.0 }
0x1521   :  { %771 = vadd.xlane.f32.xlu1 %v770_v1  ;;  %v656_v2 = vpop.permute.xlu1 %655  ;;  %v749_v34 = vld [vmem:[#allocation2 + $0x10] sm:$0xff] }
0x1522   :  { %659 = vst.msk [vmem:[#allocation2 + $0x30] sm:$0xff] %vm64_vm1, %v656_v2  ;;  %v764_v36 = vmul.f32 %v903_v28, %v749_v34 }
0x1523   :  { %220 = vrot.lane.b32.xlu0 %v1202_v52, %s1094_s1 }
0x1524   :  { %v776_v38 = vsel %vm64_vm1, %v764_v36, 0.0 }
0x1525   :  { %v751_v37 = vld [vmem:[#allocation2 + $0x20] sm:$0xff] }
0x1526   :  { %v766_v39 = vmul.f32 %v903_v28, %v751_v37 }
0x1527   :  { %394 = vrot.lane.b32.xlu0 %v1242_v42, %s1094_s1 }
0x1528   :  { %v782_v41 = vsel %vm64_vm1, %v766_v39, 0.0 }
0x1529   :  { %v753_v40 = vld [vmem:[#allocation2 + $0x30] sm:$0xff] }
0x152a   :  { %v768_v43 = vmul.f32 %v903_v28, %v753_v40 }
0x152b   :  { %568 = vrot.lane.b32.xlu0 %v1280_v31, %s1094_s1 }
0x152c   :  { %v788_v44 = vsel %vm64_vm1, %v768_v43, 0.0 }
0x1591   :  { %v738_v22 = vpop.permute.xlu0 %737 }
0x1592   :  { %v740_v23 = vmul.f32 %v1063_v14, %v738_v22 }
0x1594   :  { %742 = vrot.lane.b32.xlu0 %v740_v23, %s1094_s1 }
0x1595   :  { %v221_v24 = vpop.permute.xlu0 %220 }
0x1596   :  { %224 = vst.msk [vmem:[#allocation2 + $0x8] sm:$0xff] %vm64_vm1, %v221_v24 }
0x1599   :  { %v395_v25 = vpop.permute.xlu0 %394 }
0x159a   :  { %398 = vst.msk [vmem:[#allocation2 + $0x18] sm:$0xff] %vm64_vm1, %v395_v25 }
0x159d   :  { %v569_v26 = vpop.permute.xlu0 %568  ;;  %v748_v32 = vld [vmem:[#allocation2 + $0x8] sm:$0xff] }
0x159e   :  { %572 = vst.msk [vmem:[#allocation2 + $0x28] sm:$0xff] %vm64_vm1, %v569_v26  ;;  %v763_v33 = vmul.f32 %v903_v28, %v748_v32 }
0x15a0   :  { %v773_v35 = vsel %vm64_vm1, %v763_v33, 0.0 }
0x15a1   :  { %v750_v52 = vld [vmem:[#allocation2 + $0x18] sm:$0xff] }
0x15a2   :  { %v765_v27 = vmul.f32 %v903_v28, %v750_v52 }
0x15a4   :  { %v779_v42 = vsel %vm64_vm1, %v765_v27, 0.0 }
0x15a5   :  { %780 = vadd.xlane.f32.xlu1 %v779_v42  ;;  %v752_v29 = vld [vmem:[#allocation2 + $0x28] sm:$0xff] }
0x15a6   :  { %v767_v30 = vmul.f32 %v903_v28, %v752_v29 }
0x15a8   :  { %v785_v31 = vsel %vm64_vm1, %v767_v30, 0.0 }
0x15a9   :  { %786 = vadd.xlane.f32.xlu1 %v785_v31 }
0x15ae   :  { %v772_v53 = vpop.xlane.xlu1 %771 }
0x15af   :  { %v796_v62 = vadd.f32 %v795_v56, %v772_v53 }
0x15b1   :  { %v817_v5 = vrot.slane %v796_v62, %v816_v61 }
0x15b3   :  { %774 = vadd.xlane.f32.xlu0 %v773_v35 }
0x15b7   :  { %777 = vadd.xlane.f32.xlu0 %v776_v38 }
0x15bb   :  { %783 = vadd.xlane.f32.xlu0 %v782_v41 }
0x15bf   :  { %789 = vadd.xlane.f32.xlu0 %v788_v44 }
0x1606   :  { %v743_v45 = vpop.permute.xlu0 %742 }
0x1607   :  { %746 = vst.msk [vmem:[#allocation2 + $0x38] sm:$0xff] %vm64_vm1, %v743_v45 }
0x160e   :  { %v754_v46 = vld [vmem:[#allocation2 + $0x38] sm:$0xff] }
0x160f   :  { %v769_v47 = vmul.f32 %v903_v28, %v754_v46 }
0x1611   :  { %v791_v48 = vsel %vm64_vm1, %v769_v47, 0.0 }
0x1612   :  { %792 = vadd.xlane.f32.xlu1 %v791_v48 }
0x1632   :  { %v781_v59 = vpop.xlane.xlu1 %780 }
0x1633   :  { %v799_v9 = vadd.f32 %v795_v56, %v781_v59 }
0x1635   :  { %v829_v16 = vrot.slane %v799_v9, %v816_v61 }
0x1636   :  { %v787_v11 = vpop.xlane.xlu1 %786 }
0x1637   :  { %v801_v6 = vadd.f32 %v795_v56, %v787_v11 }
0x1639   :  { %v837_v28 = vrot.slane %v801_v6, %v816_v61 }
0x1640   :  { %v775_v49 = vpop.xlane.xlu0 %774 }
0x1641   :  { %v797_v57 = vadd.f32 %v795_v56, %v775_v49 }
0x1643   :  { %v821_v63 = vrot.slane %v797_v57, %v816_v61 }
0x1644   :  { %v778_v51 = vpop.xlane.xlu0 %777 }
0x1645   :  { %v798_v60 = vadd.f32 %v795_v56, %v778_v51  ;;  %v847_v12 = vsel %vm846_vm2, %v821_v63, %v817_v5 }
0x1647   :  { %v825_v3 = vrot.slane %v798_v60, %v816_v61 }
0x1648   :  { %v784_v58 = vpop.xlane.xlu0 %783 }
0x1649   :  { %v800_v4 = vadd.f32 %v795_v56, %v784_v58  ;;  %v849_v13 = vsel %vm848_vm3, %v825_v3, %v847_v12 }
0x164a   :  { %v851_v8 = vsel %vm850_vm4, %v829_v16, %v849_v13 }
0x164b   :  { %v833_v14 = vrot.slane %v800_v4, %v816_v61 }
0x164c   :  { %v790_v10 = vpop.xlane.xlu0 %789 }
0x164d   :  { %v802_v15 = vadd.f32 %v795_v56, %v790_v10  ;;  %v853_v18 = vsel %vm852_vm5, %v833_v14, %v851_v8 }
0x164e   :  { %v855_v21 = vsel %vm854_vm6, %v837_v28, %v853_v18 }
0x164f   :  { %v841_v19 = vrot.slane %v802_v15, %v816_v61 }
0x1651   :  { %v857_v7 = vsel %vm856_vm7, %v841_v19, %v855_v21 }
0x169f   :  { %v793_v20 = vpop.xlane.xlu1 %792 }
0x16a0   :  { %v803_v17 = vadd.f32 %v795_v56, %v793_v20 }
0x16a2   :  { %v845_v0 = vrot.slane %v803_v17, %v816_v61 }
0x16a4   :  { %v859_v1 = vsel %vm858_vm8, %v845_v0, %v857_v7 }
0x16a5   :  { %862 = vst.msk [vmem:[#allocation4] sm:$0xff] %vm861_vm9, %v859_v1 }
0x16a6   :  { %1077 = shalt.err (!%p1074_p4)
}
0x16a7   :  { %s1078_s26 = scalar_lea.hbm %s1355_s6, 128 }
0x16a8   :  { %p1079_p5 = scmp.ne.s32.totalorder %s1355_s6, %s1078_s26  ;;  %p1082_p6 = scmp.lt.u32.totalorder %s1078_s26, %s1355_s6 }
0x16aa   :  { %p1084_p7 = pnand %p1082_p6, %p1079_p5 }
0x16ac   :  { %1087 = shalt.err (!%p1084_p7)
}
0x16ad   :  { %872 = dma.vmem_to_hbm [thread:$0]  %s870_s22, 128, %s1355_s6, [#allocation5]  }
0x16ae   :  { %1088 = dma.done.wait [#allocation5], 128  }
0x16af   :  { %1089 = vsyncadd [#allocation5], 4294967168 }
0x16b0   :  { %876 = vsyncpa [#allocation5], 1 }

</bundles_post_ra>
